<compile_context>
chip_gen: v5e
topology: v5e:2x2
jax: 0.10.0
libtpu: 0.0.40
codegen_flags: <defaults>
</compile_context>

<pallas_src>
import functools

import jax
import jax.numpy as jnp
from jax.experimental import pallas as pl
from jax.experimental.pallas import tpu as pltpu

_LANES = 128
_DEFAULT_TILE_BUDGET = 6 << 20          # ~6 MiB per input buffer (2 inputs x 2 buffers)
_VMEM_LIMIT_BYTES = 48 * 1024 * 1024    # explicit scoped-VMEM limit (<= v7x 64 MiB physical)


def _sublane_multiple(itemsize: int) -> int:
    """Minimum sublane packing for the dtype: 8 (32-bit), 16 (16-bit), 32 (8-bit)."""
    return max(8, 32 // max(itemsize, 1))


def _pick_tile_rows(n_rows: int, padded_row_bytes: int, itemsize: int,
                    budget: int) -> int:
    """Rows per block: whole array if it fits the per-buffer budget, otherwise a
    multiple of the dtype's sublane packing sized to the budget."""
    if n_rows * padded_row_bytes <= budget:
        return n_rows
    sub = _sublane_multiple(itemsize)
    t = (budget // max(padded_row_bytes, 1)) // sub * sub
    return max(sub, min(t, n_rows))


def _seg_match_kernel(seg_ref, pred_ref, true_ref, out_ref, *,
                      valid_rows, tile_rows, needs_mask):
    """Lane-dense path (L == 128): per-sample "all labels equal" via one MXU matmul
    against a hoisted, VMEM-resident 0/1 segment matrix."""
    # Mismatch in native dtype; 0/1 values in bf16 accumulate exactly in f32 on the
    # MXU (portable: v7x MXU has no integer support, so bf16 is the right choice).
    neq = (pred_ref[...] != true_ref[...]).astype(jnp.bfloat16)            # (tile_rows, 128)
    seg_mism = jnp.dot(neq, seg_ref[...], preferred_element_type=jnp.float32)
    matched = seg_mism == 0.0                                              # (tile_rows, 128)

    def _emit(m):
        out_ref[...] = jnp.sum(m.astype(jnp.int32), axis=0,
                               keepdims=True).reshape(1, 1, _LANES)

    if needs_mask:
        # Only the ragged last tile pays for the row-validity mask.
        i = pl.program_id(0)
        is_last = i == pl.num_programs(0) - 1

        @pl.when(is_last)
        def _():
            row = (jax.lax.broadcasted_iota(jnp.int32, (tile_rows, _LANES), 0)
                   + i * tile_rows)
            _emit(matched & (row < valid_rows))

        @pl.when(jnp.logical_not(is_last))
        def _():
            _emit(matched)
    else:
        _emit(matched)


def _rowwise_match_kernel(pred_ref, true_ref, out_ref, *,
                          num_samples, tile_rows, needs_mask):
    """General path (any L): one sample per row. Blocks read the input's native
    (lane-padded) HBM layout directly — no wrapper reshape/relayout copy."""
    neq = (pred_ref[...] != true_ref[...]).astype(jnp.int32)               # (tile_rows, L)
    mism = jnp.sum(neq, axis=-1, keepdims=True)                            # (tile_rows, 1)
    matched = mism == 0

    def _emit(m):
        total = jnp.sum(m.astype(jnp.int32))
        # Lane-dense output block => unmasked store; wrapper reads lane 0.
        out_ref[...] = jnp.full((1, 1, _LANES), total, dtype=jnp.int32)

    if needs_mask:
        i = pl.program_id(0)
        is_last = i == pl.num_programs(0) - 1

        @pl.when(is_last)
        def _():
            row = (jax.lax.broadcasted_iota(jnp.int32, (tile_rows, 1), 0)
                   + i * tile_rows)
            _emit(matched & (row < num_samples))

        @pl.when(jnp.logical_not(is_last))
        def _():
            _emit(matched)
    else:
        _emit(matched)


def subset_accuracy(predict_labels: jax.Array, true_labels: jax.Array, *,
                    tile_budget_bytes: int = _DEFAULT_TILE_BUDGET) -> jax.Array:
    """Exact-match (subset) accuracy between two (N, L) label arrays."""
    assert predict_labels.shape == true_labels.shape
    pred, true = predict_labels, true_labels
    if pred.ndim == 1:                       # accuracy_score also accepts 1-D targets
        pred = pred[:, None]
        true = true[:, None]
    assert pred.ndim == 2
    N, L = pred.shape
    if N == 0:
        return jnp.float32(0.0)

    if pred.dtype != true.dtype:
        common = jnp.promote_types(pred.dtype, true.dtype)
        pred = pred.astype(common)
        true = true.astype(common)
    itemsize = pred.dtype.itemsize

    compiler_params = pltpu.CompilerParams(
        dimension_semantics=("parallel",),
        vmem_limit_bytes=_VMEM_LIMIT_BYTES)

    if L == _LANES:
        # Lane-dense MXU path. Restricted to L == 128 so the kernel reads the inputs
        # as-is (no host-side reshape that could force an XLA relayout copy).
        # TODO(synk): for L < 128 dividing 128, a packed (N*L/128, 128) view would raise
        # lane utilization, but the reshape materializes a relayout (extra full HBM pass)
        # which is a net loss for this mem-bound kernel; the row-wise path handles it.
        tile_rows = _pick_tile_rows(N, _LANES * itemsize, itemsize, tile_budget_bytes)
        num_tiles = pl.cdiv(N, tile_rows)
        needs_mask = (N % tile_rows) != 0

        # Block-diagonal segment matrix, built once in JAX (32 KiB bf16) and kept
        # resident in VMEM via a constant block index (no re-DMA per grid step).
        lane = jnp.arange(_LANES, dtype=jnp.int32)
        seg = ((lane[:, None] // L) == (lane[None, :] // L)).astype(jnp.bfloat16)

        kernel = functools.partial(
            _seg_match_kernel, valid_rows=N, tile_rows=tile_rows, needs_mask=needs_mask)

        partials = pl.pallas_call(
            kernel,
            out_shape=jax.ShapeDtypeStruct((num_tiles, 1, _LANES), jnp.int32),
            grid=(num_tiles,),
            in_specs=[
                pl.BlockSpec((_LANES, _LANES), lambda i: (0, 0)),      # resident constant
                pl.BlockSpec((tile_rows, _LANES), lambda i: (i, 0)),
                pl.BlockSpec((tile_rows, _LANES), lambda i: (i, 0)),
            ],
            out_specs=pl.BlockSpec((1, 1, _LANES), lambda i: (i, 0, 0)),
            compiler_params=compiler_params,
        )(seg, pred, true)

        lane_totals = jnp.sum(partials, axis=(0, 1))          # (128,)
        matches = jnp.sum(lane_totals[::L])                   # one lane per sample segment
    else:
        # Row-wise path for any L. VMEM block size uses the lane-PADDED row width.
        padded_row_bytes = pl.cdiv(L, _LANES) * _LANES * itemsize
        tile_rows = _pick_tile_rows(N, padded_row_bytes, itemsize, tile_budget_bytes)
        num_tiles = pl.cdiv(N, tile_rows)
        needs_mask = (N % tile_rows) != 0

        kernel = functools.partial(
            _rowwise_match_kernel, num_samples=N, tile_rows=tile_rows,
            needs_mask=needs_mask)

        partials = pl.pallas_call(
            kernel,
            out_shape=jax.ShapeDtypeStruct((num_tiles, 1, _LANES), jnp.int32),
            grid=(num_tiles,),
            in_specs=[
                pl.BlockSpec((tile_rows, L), lambda i: (i, 0)),
                pl.BlockSpec((tile_rows, L), lambda i: (i, 0)),
            ],
            out_specs=pl.BlockSpec((1, 1, _LANES), lambda i: (i, 0, 0)),
            compiler_params=compiler_params,
        )(pred, true)

        matches = jnp.sum(partials[:, 0, 0])

    return matches.astype(jnp.float32) / jnp.float32(N)


if __name__ == "__main__":
    key = jax.random.PRNGKey(0)
    k1, k2, k3, k4, k5, k6 = jax.random.split(key, 6)

    def _ref(p, t):
        return jnp.mean(jnp.all(p == t, axis=-1).astype(jnp.float32))

    # --- lane-dense MXU path: L == 128, single tile ---
    N1, L1 = 20, 128
    t1 = jax.random.randint(k1, (N1, L1), 0, 2, dtype=jnp.int32)
    flip1 = (jax.random.uniform(k2, (N1, L1)) < 0.02).astype(jnp.int32)
    p1 = jnp.bitwise_xor(t1, flip1)

    acc1 = jax.block_until_ready(subset_accuracy(p1, t1))
    assert jnp.allclose(acc1, _ref(p1, t1)), (acc1, _ref(p1, t1))

    # Same data, tiny tile budget -> multi-tile grid with a ragged last tile
    # (exercises the pl.when-gated row-validity mask).
    acc1b = jax.block_until_ready(
        subset_accuracy(p1, t1, tile_budget_bytes=8 * 128 * 4))
    assert jnp.allclose(acc1b, _ref(p1, t1)), (acc1b, _ref(p1, t1))

    # --- generic row-wise path: small L that does not divide 128 ---
    N2, L2 = 12, 5
    t2 = jax.random.randint(k3, (N2, L2), 0, 3, dtype=jnp.int32)
    p2 = t2 + (jax.random.uniform(k4, (N2, L2)) < 0.15).astype(jnp.int32)

    acc2 = jax.block_until_ready(subset_accuracy(p2, t2))
    assert jnp.allclose(acc2, _ref(p2, t2)), (acc2, _ref(p2, t2))

    acc2b = jax.block_until_ready(
        subset_accuracy(p2, t2, tile_budget_bytes=8 * 128 * 4))
    assert jnp.allclose(acc2b, _ref(p2, t2)), (acc2b, _ref(p2, t2))

    # --- generic path, multilabel binary targets (N=8, L=16) ---
    N3, L3 = 8, 16
    t3 = jax.random.randint(k5, (N3, L3), 0, 2, dtype=jnp.int32)
    flip3 = (jax.random.uniform(k6, (N3, L3)) < 0.1).astype(jnp.int32)
    p3 = jnp.bitwise_xor(t3, flip3)

    acc3 = jax.block_until_ready(subset_accuracy(p3, t3))
    assert jnp.allclose(acc3, _ref(p3, t3)), (acc3, _ref(p3, t3))

    print("KERNEL_OK")
</pallas_src>

<mosaic_0001>
module attributes {stable_mosaic.version = 11 : i64} {
  func.func @_seg_match_kernel(%arg0: i32, %arg1: memref<128x128xbf16, #tpu.memory_space<vmem>>, %arg2: memref<20x128xi32, #tpu.memory_space<vmem>>, %arg3: memref<20x128xi32, #tpu.memory_space<vmem>>, %arg4: memref<1x1x128xi32, #tpu.memory_space<vmem>>) attributes {dimension_semantics = [#tpu.dimension_semantics<parallel>], iteration_bounds = array<i64: 1>, scalar_prefetch = 0 : i64, scratch_operands = 0 : i64, tpu.core_type = #tpu.core_type<tc>, window_params = [{pipeline_mode = #tpu.pipeline_mode<synchronous>, transform_indices = @transform_0, window_bounds = array<i64: 128, 128>}, {transform_indices = @transform_1, window_bounds = array<i64: 20, 128>}, {transform_indices = @transform_2, window_bounds = array<i64: 20, 128>}, {transform_indices = @transform_3, window_bounds = array<i64: 1, 1, 128>}]} {
    %c0 = arith.constant 0 : index
    %c0_0 = arith.constant 0 : index
    %0 = vector.load %arg2[%c0, %c0_0] : memref<20x128xi32, #tpu.memory_space<vmem>>, vector<20x128xi32>
    %c0_1 = arith.constant 0 : index
    %c0_2 = arith.constant 0 : index
    %1 = vector.load %arg3[%c0_1, %c0_2] : memref<20x128xi32, #tpu.memory_space<vmem>>, vector<20x128xi32>
    %2 = arith.cmpi ne, %0, %1 : vector<20x128xi32>
    %3 = arith.extui %2 : vector<20x128xi1> to vector<20x128xi32>
    %4 = arith.sitofp %3 : vector<20x128xi32> to vector<20x128xf32>
    %5 = arith.truncf %4 : vector<20x128xf32> to vector<20x128xbf16>
    %c0_3 = arith.constant 0 : index
    %c0_4 = arith.constant 0 : index
    %6 = vector.load %arg1[%c0_3, %c0_4] : memref<128x128xbf16, #tpu.memory_space<vmem>>, vector<128x128xbf16>
    %cst = arith.constant dense<0.000000e+00> : vector<20x128xf32>
    %7 = tpu.matmul %5, %6, %cst {dimension_numbers = #tpu.dot_dimension_numbers<[1], [0], [0], [1], [0, 0, 1, 1], [], []>} : vector<20x128xbf16>, vector<128x128xbf16>, vector<20x128xf32> -> vector<20x128xf32>
    %cst_5 = arith.constant 0.000000e+00 : f32
    %8 = vector.broadcast %cst_5 : f32 to vector<20x128xf32>
    %9 = arith.cmpf oeq, %7, %8 : vector<20x128xf32>
    %10 = arith.extui %9 : vector<20x128xi1> to vector<20x128xi32>
    %cst_6 = arith.constant dense<0> : vector<128xi32>
    %11 = vector.multi_reduction <add>, %10, %cst_6 [0] : vector<20x128xi32> to vector<128xi32>
    %12 = vector.shape_cast %11 : vector<128xi32> to vector<1x128xi32>
    %13 = vector.shape_cast %12 : vector<1x128xi32> to vector<1x1x128xi32>
    %c0_7 = arith.constant 0 : index
    %c0_8 = arith.constant 0 : index
    %c0_9 = arith.constant 0 : index
    %14 = vector.load %arg4[%c0_7, %c0_8, %c0_9] : memref<1x1x128xi32, #tpu.memory_space<vmem>>, vector<1x1x128xi32>
    tpu.vector_store %arg4[%c0_7, %c0_8, %c0_9], %13 {strides = array<i32>} : memref<1x1x128xi32, #tpu.memory_space<vmem>>, vector<1x1x128xi32>,
    return
  }
  func.func @transform_0(%arg0: i32) -> (i32, i32) {
    %c0_i32 = arith.constant 0 : i32
    %c0_i32_0 = arith.constant 0 : i32
    %c0_i32_1 = arith.constant 0 : i32
    return %c0_i32, %c0_i32_0 : i32, i32
  }
  func.func @transform_1(%arg0: i32) -> (i32, i32) {
    %c0_i32 = arith.constant 0 : i32
    %c0_i32_0 = arith.constant 0 : i32
    return %arg0, %c0_i32 : i32, i32
  }
  func.func @transform_2(%arg0: i32) -> (i32, i32) {
    %c0_i32 = arith.constant 0 : i32
    %c0_i32_0 = arith.constant 0 : i32
    return %arg0, %c0_i32 : i32, i32
  }
  func.func @transform_3(%arg0: i32) -> (i32, i32, i32) {
    %c0_i32 = arith.constant 0 : i32
    %c0_i32_0 = arith.constant 0 : i32
    %c0_i32_1 = arith.constant 0 : i32
    return %arg0, %c0_i32, %c0_i32_0 : i32, i32, i32
  }
}

</mosaic_0001>

<bundles_post_ra>
// kernel: tpu_custom_call.1
= control target key start
LH: loop header
LB: loop body
LE: loop exit
PB: predicated region body
PF: predicated region fallthrough
CT: control target
= control target key end

     0   :  { %8 = vsyncpa [#allocation3], 0  ;;  %s405_s0 = inlined_call_operand.hbm [shape: bf16[128,128], index: 0, kind: input, shape index: {}]   ;;  %s406_s1 = inlined_call_operand.hbm [shape: s32[20,128], index: 1, kind: input, shape index: {}]   ;;  %s407_s2 = inlined_call_operand.hbm [shape: s32[20,128], index: 2, kind: input, shape index: {}]   ;;  %s408_s3 = inlined_call_operand.hbm [shape: s32[1,1,128], index: 3, kind: output, shape index: {}]  }
   0x1   :  { %9 = vsyncpa [#allocation6], 0  ;;  %s28_s14 = sshll.u32 %s406_s1, 4  ;;  %s29_s14 = int_to_ptr.hbm [resolvable:$true] %s28_s14 }
   0x2   :  { %10 = vsyncpa [#allocation4], 0  ;;  %s363_s15 = smov [#allocation5]   ;;  %s15_s19 = sshll.u32 %s405_s0, 4  ;;  %s16_s19 = int_to_ptr.hbm [resolvable:$true] %s15_s19 }
   0x3   :  { %s30_s16 = sshll.u32 %s363_s15, 4  ;;  %s364_s20 = smov 128   ;;  %s31_s16 = int_to_ptr.vmem [resolvable:$true] %s30_s16 }
   0x4   :  { %s365_s21 = smov 8   ;;  %s366_s22 = smov [#allocation2]  }
   0x5   :  { %36 = dma.hbm_to_vmem [thread:$0]  %s29_s14, 384, %s31_s16, [#allocation6], %s364_s20, %s364_s20, %s365_s21  }
   0x6   :  { %s17_s23 = sshll.u32 %s366_s22, 4  ;;  %s367_s24 = smov 64   ;;  %s18_s23 = int_to_ptr.vmem [resolvable:$true] %s17_s23 }
   0x7   :  { %s368_s25 = smov 4   ;;  %s41_s27 = sshll.u32 %s407_s2, 4  ;;  %s42_s27 = int_to_ptr.hbm [resolvable:$true] %s41_s27 }
   0x8   :  { %23 = dma.hbm_to_vmem [thread:$0]  %s16_s19, 1024, %s18_s23, [#allocation3], %s367_s24, %s367_s24, %s368_s25  }
   0x9   :  { %s369_s28 = smov [#allocation7]  }
   0xa   :  { %s43_s29 = sshll.u32 %s369_s28, 4  ;;  %s44_s29 = int_to_ptr.vmem [resolvable:$true] %s43_s29 }
   0xb   :  { %49 = dma.hbm_to_vmem [thread:$0]  %s42_s27, 384, %s44_s29, [#allocation6], %s364_s20, %s364_s20, %s365_s21  }
   0xc   :  { %357 = dma.done.wait [#allocation3], 1024  }
   0xd   :  { %358 = vsyncadd [#allocation3], 4294966272 }
   0xe   :  { %359 = dma.done.wait [#allocation6], 768  }
   0xf   :  { %360 = vsyncadd [#allocation6], 4294966528  ;;  %v242_v0 = vld [vmem:[#allocation2 + $0x38] sm:$0xff]  ;;  %v241_v1 = vld [vmem:[#allocation2 + $0x30] sm:$0xff]  ;;  %v370_v14 = vmov 1.0|1.0  }
  0x10   :  { %143 = vmatpush.bf16.msra.mxu0 %v242_v0  ;;  %243 = vmatpush.bf16.msra.mxu1 %v242_v0  ;;  %v240_v2 = vld [vmem:[#allocation2 + $0x28] sm:$0xff]  ;;  %v239_v3 = vld [vmem:[#allocation2 + $0x20] sm:$0xff]  ;;  %v238_v4 = vld [vmem:[#allocation2 + $0x18] sm:$0xff]  ;;  %v371_v17 = vmov 0   ;;  %vm167_vm7 = vcmask 1043456   ;;  %s372_s0 = smov [#allocation8]  }
  0x11   :  { %v237_v5 = vld [vmem:[#allocation2 + $0x10] sm:$0xff]  ;;  %v236_v6 = vld [vmem:[#allocation2 + $0x8] sm:$0xff]  ;;  %v62_v7 = vld [vmem:[#allocation5] sm:$0xff]  ;;  %s183_s2 = sshll.u32 %s372_s0, 4  ;;  %s185_s5 = sshll.u32 %s408_s3, 4  ;;  %s184_s2 = int_to_ptr.vmem [resolvable:$true] %s183_s2  ;;  %s186_s5 = int_to_ptr.hbm [resolvable:$true] %s185_s5 }
  0x12   :  { %v63_v8 = vld [vmem:[#allocation5 + $0x8] sm:$0xff]  ;;  %v65_v9 = vld [vmem:[#allocation7] sm:$0xff]  ;;  %v66_v10 = vld [vmem:[#allocation7 + $0x8] sm:$0xff] }
  0x13   :  { %v64_v11 = vld [vmem:[#allocation5 + $0x10] sm:$0xf]  ;;  %v67_v12 = vld [vmem:[#allocation7 + $0x10] sm:$0xf]  ;;  %v235_v13 = vld [vmem:[#allocation2] sm:$0xff]  ;;  %vm68_vm0 = vcmp.ne.s32.totalorder %v62_v7, %v65_v9  ;;  %vm69_vm1 = vcmp.ne.s32.totalorder %v63_v8, %v66_v10 }
  0x14   :  { %144 = vmatpush.bf16.msra.mxu0 %v241_v1  ;;  %244 = vmatpush.bf16.msra.mxu1 %v241_v1  ;;  %vm70_vm2 = vcmp.ne.s32.totalorder %v64_v11, %v67_v12  ;;  %vm231_vm3 = vmpackc.low %vm69_vm1, %vm68_vm0 }
  0x15   :  { %vm233_vm4 = vmpackc.low %vm70_vm2, %vm70_vm2 }
  0x18   :  { %145 = vmatpush.bf16.msra.mxu0 %v240_v2  ;;  %245 = vmatpush.bf16.msra.mxu1 %v240_v2 }
  0x1c   :  { %146 = vmatpush.bf16.msra.mxu0 %v239_v3  ;;  %246 = vmatpush.bf16.msra.mxu1 %v239_v3 }
  0x20   :  { %147 = vmatpush.bf16.msra.mxu0 %v238_v4  ;;  %247 = vmatpush.bf16.msra.mxu1 %v238_v4 }
  0x24   :  { %148 = vmatpush.bf16.msra.mxu0 %v237_v5  ;;  %248 = vmatpush.bf16.msra.mxu1 %v237_v5 }
  0x28   :  { %149 = vmatpush.bf16.msra.mxu0 %v236_v6  ;;  %249 = vmatpush.bf16.msra.mxu1 %v236_v6 }
  0x2c   :  { %150 = vmatpush.bf16.msra.mxu0 %v235_v13  ;;  %250 = vmatpush.bf16.msra.mxu1 %v235_v13 }
  0x2f   :  { %232 = vmatmul.msk.bf16.vlgmr.msra.gmra.mxu0 %vm231_vm3, %v370_v14  ;;  %234 = vmatmul.msk.bf16.vlgmr.msra.gmra.mxu1 %vm233_vm4, %v370_v14 }
  0xac   :  { %v152_v15 = vpop.f32.mrf.mxu0  ;;  %v157_v16 = vpop.f32.mrf.mxu1 }
  0xad   :  { %vm163_vm5 = vcmp.eq.f32.partialorder %v157_v16, 0.0  ;;  %vm161_vm6 = vcmp.eq.f32.partialorder %v152_v15, 0.0 }
  0xae   :  { %v166_v18 = vsel %vm163_vm5, 1, %v371_v17  ;;  %v164_v21 = vsel %vm161_vm6, 1, %v371_v17 }
  0xaf   :  { %v168_v22 = vsel %vm167_vm7, %v166_v18, 0 }
  0xb4   :  { %v154_v19 = vpop.f32.mrf.mxu0  ;;  %v159_v20 = vpop.f32.mrf.mxu1 }
  0xb5   :  { %vm162_vm8 = vcmp.eq.f32.partialorder %v154_v19, 0.0 }
  0xb6   :  { %v165_v23 = vsel %vm162_vm8, 1, %v371_v17 }
  0xb7   :  { %v169_v24 = vadd.s32 %v165_v23, %v164_v21 }
  0xb9   :  { %v170_v25 = vadd.s32 %v169_v24, %v168_v22 }
  0xbb   :  { %v171_v26 = vrot.slane %v170_v25, 4 }
  0xbd   :  { %v172_v27 = vadd.s32 %v171_v26, %v170_v25 }
  0xbf   :  { %v173_v28 = vrot.slane %v172_v27, 2 }
  0xc1   :  { %v174_v29 = vadd.s32 %v173_v28, %v172_v27 }
  0xc3   :  { %v175_v30 = vrot.slane %v174_v29, 1 }
  0xc5   :  { %v176_v31 = vadd.s32 %v175_v30, %v174_v29 }
  0xc7   :  { %177 = vst [vmem:[#allocation8] sm:$0x1] %v176_v31 }
  0xc8   :  { %188 = dma.vmem_to_hbm [thread:$0]  %s184_s2, 16, %s186_s5, [#allocation4]  }
  0xc9   :  { %361 = dma.done.wait [#allocation4], 16  }
  0xca   :  { %362 = vsyncadd [#allocation4], 4294967280 }
  0xcb   :  { %193 = vsyncpa [#allocation3], 1 }
  0xcc   :  { %194 = vsyncpa [#allocation6], 1 }
  0xcd   :  { %195 = vsyncpa [#allocation4], 1 }

</bundles_post_ra>
